<compile_context>
chip_gen: v5e
topology: v5e:2x2
jax: 0.10.0
libtpu: 0.0.40
codegen_flags: <defaults>
</compile_context>

<pallas_src>
import jax
import jax.numpy as jnp
from jax.experimental import pallas as pl
from jax.experimental.pallas import tpu as pltpu

PAD = 128        # lane width for hidden layers (MXU-friendly)
HIDDEN1 = 64     # true hidden sizes (zero-padded up to PAD lanes)
HIDDEN2 = 32


def _round_up(n, m):
    return (n + m - 1) // m * m


def mlp_kernel(x_ref, w1_ref, b1_ref, w2_ref, b2_ref, w3_ref, b3_ref, out_ref):
    """Fused 3-layer MLP on one (tb, in_pad) row tile.

    (x@W1+b1) -> ReLU -> (h1@W2+b2) -> ReLU -> (h2@W3+b3)[:, :out_pad]

    Layer 1 keeps x in f32 (K is tiny, cost negligible); layers 2/3 feed the
    MXU bf16 activations/weights with f32 accumulation.  Bias add and ReLU run
    in f32.  Zero-padded rows/cols contribute exactly 0, so padded hidden
    lanes stay 0 through ReLU and padded logit lanes are 0 (sliced off).
    """
    h1 = jnp.dot(x_ref[...], w1_ref[...], preferred_element_type=jnp.float32)
    h1 = jnp.maximum(h1 + b1_ref[...], 0.0)

    h2 = jnp.dot(h1.astype(jnp.bfloat16), w2_ref[...],
                 preferred_element_type=jnp.float32)
    h2 = jnp.maximum(h2 + b2_ref[...], 0.0)

    logits = jnp.dot(h2.astype(jnp.bfloat16), w3_ref[...],
                     preferred_element_type=jnp.float32)
    logits = logits + b3_ref[...]

    # Slim store: only the first out_pad (= num_classes rounded up to 8) lanes
    # ever reach HBM.
    out_ref[...] = logits[:, : out_ref.shape[1]].astype(out_ref.dtype)


def email_classifier_mlp(x, params, *, num_classes=4, block_rows=2048):
    """Run the fused MLP kernel. x: (B, input_size) f32 -> (B, num_classes) f32 logits."""
    w1, b1, w2, b2, w3, b3 = params
    B, in_features = x.shape
    in_pad = w1.shape[0]                      # input features padded to 8 lanes
    out_pad = _round_up(num_classes, 8)       # logit lanes actually written to HBM

    # Row tile: multiple of 8 sublanes.  Big tiles amortize per-grid-step cost;
    # >= 2 steps (when B allows) lets the "parallel" batch axis use both
    # TensorCores on v7x.
    n_steps = pl.cdiv(B, block_rows)
    if B > 8:
        n_steps = max(n_steps, 2)
    tb = _round_up(pl.cdiv(B, n_steps), 8)
    b_pad = _round_up(B, tb)
    grid = (b_pad // tb,)

    # Pad batch rows / feature lanes only to (b_pad, in_pad) (32 B/row), not a
    # 128-lane slab; zero padding keeps the math exact.
    if (B, in_features) != (b_pad, in_pad):
        xp = jnp.zeros((b_pad, in_pad), jnp.float32).at[:B, :in_features].set(x)
    else:
        xp = x.astype(jnp.float32)

    # Weights/biases (~70 KiB total) have constant block indices, so they are
    # DMA'd once and stay VMEM-resident across all grid steps.
    resident = lambda a: pl.BlockSpec(a.shape, lambda i: (0, 0))

    # Honest cost hint: true (unpadded) model flops + bytes actually streamed.
    flops = 2 * B * (in_features * HIDDEN1 + HIDDEN1 * HIDDEN2
                     + HIDDEN2 * num_classes)
    bytes_accessed = (int(xp.size) * xp.dtype.itemsize
                      + sum(int(p.size) * p.dtype.itemsize for p in params)
                      + b_pad * out_pad * 4)

    out = pl.pallas_call(
        mlp_kernel,
        out_shape=jax.ShapeDtypeStruct((b_pad, out_pad), jnp.float32),
        grid=grid,
        in_specs=[
            pl.BlockSpec((tb, in_pad), lambda i: (i, 0)),   # x streamed per row tile
            resident(w1), resident(b1),
            resident(w2), resident(b2),
            resident(w3), resident(b3),
        ],
        out_specs=pl.BlockSpec((tb, out_pad), lambda i: (i, 0)),  # slim output
        compiler_params=pltpu.CompilerParams(
            dimension_semantics=("parallel",)),
        cost_estimate=pl.CostEstimate(flops=flops, transcendentals=0,
                                      bytes_accessed=bytes_accessed),
    )(xp, w1, b1, w2, b2, w3, b3)

    return out[:B, :num_classes]


def init_params(key, input_size=6, hidden1=HIDDEN1, hidden2=HIDDEN2, num_classes=4):
    """Xavier/Glorot-uniform weights (true fan sizes), zero biases.

    Weights are laid out (in_features, out_features).  W1 stays f32, padded
    only to (round_up(input_size, 8), 128) so the streamed input is 8 lanes
    wide; W2/W3 are zero-padded to (128, 128) and stored bf16 (the kernel
    accumulates in f32).  Biases are (1, 128) f32 zeros.  Zero padding keeps
    padded lanes numerically exact.
    """
    k1, k2, k3 = jax.random.split(key, 3)
    in_pad = _round_up(input_size, 8)

    def xavier(k, fan_in, fan_out):
        bound = (6.0 / (fan_in + fan_out)) ** 0.5
        return jax.random.uniform(k, (fan_in, fan_out), jnp.float32,
                                  minval=-bound, maxval=bound)

    def pad_w(w, rows, cols, dtype):
        wp = jnp.zeros((rows, cols), jnp.float32)
        wp = wp.at[: w.shape[0], : w.shape[1]].set(w)
        return wp.astype(dtype)

    w1 = pad_w(xavier(k1, input_size, hidden1), in_pad, PAD, jnp.float32)
    w2 = pad_w(xavier(k2, hidden1, hidden2), PAD, PAD, jnp.bfloat16)
    w3 = pad_w(xavier(k3, hidden2, num_classes), PAD, PAD, jnp.bfloat16)
    zero_bias = jnp.zeros((1, PAD), jnp.float32)
    return (w1, zero_bias, w2, zero_bias, w3, zero_bias)


def reference_forward(x, params, num_classes):
    """Pure-JAX reference mirroring the kernel math
    (f32 layer 1, bf16 MXU inputs for layers 2/3, f32 accumulation)."""
    w1, b1, w2, b2, w3, b3 = params
    B, in_features = x.shape
    xr = jnp.zeros((B, w1.shape[0]), jnp.float32).at[:, :in_features].set(x)
    h1 = jnp.maximum(
        jnp.dot(xr, w1, preferred_element_type=jnp.float32,
                precision=jax.lax.Precision.HIGHEST) + b1, 0.0)
    h2 = jnp.maximum(
        jnp.dot(h1.astype(jnp.bfloat16), w2,
                preferred_element_type=jnp.float32) + b2, 0.0)
    logits = jnp.dot(h2.astype(jnp.bfloat16), w3,
                     preferred_element_type=jnp.float32) + b3
    return logits[:, :num_classes]


if __name__ == "__main__":
    key = jax.random.PRNGKey(0)
    k_x1, k_x2, k_p = jax.random.split(key, 3)

    batch, input_size, num_classes = 8, 6, 4
    params = init_params(k_p, input_size=input_size, num_classes=num_classes)

    # Small single-tile case (grid = 1).
    x = jax.random.normal(k_x1, (batch, input_size), jnp.float32)
    logits = email_classifier_mlp(x, params, num_classes=num_classes)
    jax.block_until_ready(logits)
    assert logits.shape == (batch, num_classes)
    ref = reference_forward(x, params, num_classes)
    # MXU default-precision pass structure can differ slightly from the XLA
    # reference; 5e-3 on O(0.3) logits still catches any wiring/padding bug.
    assert jnp.allclose(logits, ref, atol=5e-3, rtol=5e-3)

    # Multi-step grid + batch-padding case (B=20 -> tb=16, grid=2, 12 pad rows).
    x2 = jax.random.normal(k_x2, (20, input_size), jnp.float32)
    logits2 = email_classifier_mlp(x2, params, num_classes=num_classes)
    jax.block_until_ready(logits2)
    assert logits2.shape == (20, num_classes)
    assert jnp.allclose(logits2, reference_forward(x2, params, num_classes),
                        atol=5e-3, rtol=5e-3)

    # TODO(synk): training-mode dropout (p=0.3) would need pltpu.prng_* inside
    # the kernel; this forward matches eval/inference semantics (identity).
    print("KERNEL_OK")
</pallas_src>

<mosaic_0001>
module attributes {stable_mosaic.version = 11 : i64} {
  func.func @mlp_kernel(%arg0: i32, %arg1: memref<8x8xf32, #tpu.memory_space<vmem>>, %arg2: memref<8x128xf32, #tpu.memory_space<vmem>>, %arg3: memref<1x128xf32, #tpu.memory_space<vmem>>, %arg4: memref<128x128xbf16, #tpu.memory_space<vmem>>, %arg5: memref<1x128xf32, #tpu.memory_space<vmem>>, %arg6: memref<128x128xbf16, #tpu.memory_space<vmem>>, %arg7: memref<1x128xf32, #tpu.memory_space<vmem>>, %arg8: memref<8x8xf32, #tpu.memory_space<vmem>>) attributes {dimension_semantics = [#tpu.dimension_semantics<parallel>], iteration_bounds = array<i64: 1>, scalar_prefetch = 0 : i64, scratch_operands = 0 : i64, tpu.core_type = #tpu.core_type<tc>, window_params = [{transform_indices = @transform_0, window_bounds = array<i64: 8, 8>}, {pipeline_mode = #tpu.pipeline_mode<synchronous>, transform_indices = @transform_1, window_bounds = array<i64: 8, 128>}, {pipeline_mode = #tpu.pipeline_mode<synchronous>, transform_indices = @transform_2, window_bounds = array<i64: 1, 128>}, {pipeline_mode = #tpu.pipeline_mode<synchronous>, transform_indices = @transform_3, window_bounds = array<i64: 128, 128>}, {pipeline_mode = #tpu.pipeline_mode<synchronous>, transform_indices = @transform_4, window_bounds = array<i64: 1, 128>}, {pipeline_mode = #tpu.pipeline_mode<synchronous>, transform_indices = @transform_5, window_bounds = array<i64: 128, 128>}, {pipeline_mode = #tpu.pipeline_mode<synchronous>, transform_indices = @transform_6, window_bounds = array<i64: 1, 128>}, {transform_indices = @transform_7, window_bounds = array<i64: 8, 8>}]} {
    %c0 = arith.constant 0 : index
    %c0_0 = arith.constant 0 : index
    %0 = vector.load %arg1[%c0, %c0_0] : memref<8x8xf32, #tpu.memory_space<vmem>>, vector<8x8xf32>
    %c0_1 = arith.constant 0 : index
    %c0_2 = arith.constant 0 : index
    %1 = vector.load %arg2[%c0_1, %c0_2] : memref<8x128xf32, #tpu.memory_space<vmem>>, vector<8x128xf32>
    %cst = arith.constant dense<0.000000e+00> : vector<8x128xf32>
    %2 = tpu.matmul %0, %1, %cst {dimension_numbers = #tpu.dot_dimension_numbers<[1], [0], [0], [1], [0, 0, 1, 1], [], []>} : vector<8x8xf32>, vector<8x128xf32>, vector<8x128xf32> -> vector<8x128xf32>
    %c0_3 = arith.constant 0 : index
    %c0_4 = arith.constant 0 : index
    %3 = vector.load %arg3[%c0_3, %c0_4] : memref<1x128xf32, #tpu.memory_space<vmem>>, vector<1x128xf32>
    %4 = vector.broadcast %3 : vector<1x128xf32> to vector<8x128xf32>
    %5 = arith.addf %2, %4 : vector<8x128xf32>
    %cst_5 = arith.constant 0.000000e+00 : f32
    %6 = vector.broadcast %cst_5 : f32 to vector<8x128xf32>
    %7 = arith.maximumf %5, %6 : vector<8x128xf32>
    %8 = arith.truncf %7 : vector<8x128xf32> to vector<8x128xbf16>
    %c0_6 = arith.constant 0 : index
    %c0_7 = arith.constant 0 : index
    %9 = vector.load %arg4[%c0_6, %c0_7] : memref<128x128xbf16, #tpu.memory_space<vmem>>, vector<128x128xbf16>
    %cst_8 = arith.constant dense<0.000000e+00> : vector<8x128xf32>
    %10 = tpu.matmul %8, %9, %cst_8 {dimension_numbers = #tpu.dot_dimension_numbers<[1], [0], [0], [1], [0, 0, 1, 1], [], []>} : vector<8x128xbf16>, vector<128x128xbf16>, vector<8x128xf32> -> vector<8x128xf32>
    %c0_9 = arith.constant 0 : index
    %c0_10 = arith.constant 0 : index
    %11 = vector.load %arg5[%c0_9, %c0_10] : memref<1x128xf32, #tpu.memory_space<vmem>>, vector<1x128xf32>
    %12 = vector.broadcast %11 : vector<1x128xf32> to vector<8x128xf32>
    %13 = arith.addf %10, %12 : vector<8x128xf32>
    %cst_11 = arith.constant 0.000000e+00 : f32
    %14 = vector.broadcast %cst_11 : f32 to vector<8x128xf32>
    %15 = arith.maximumf %13, %14 : vector<8x128xf32>
    %16 = arith.truncf %15 : vector<8x128xf32> to vector<8x128xbf16>
    %c0_12 = arith.constant 0 : index
    %c0_13 = arith.constant 0 : index
    %17 = vector.load %arg6[%c0_12, %c0_13] : memref<128x128xbf16, #tpu.memory_space<vmem>>, vector<128x128xbf16>
    %cst_14 = arith.constant dense<0.000000e+00> : vector<8x128xf32>
    %18 = tpu.matmul %16, %17, %cst_14 {dimension_numbers = #tpu.dot_dimension_numbers<[1], [0], [0], [1], [0, 0, 1, 1], [], []>} : vector<8x128xbf16>, vector<128x128xbf16>, vector<8x128xf32> -> vector<8x128xf32>
    %c0_15 = arith.constant 0 : index
    %c0_16 = arith.constant 0 : index
    %19 = vector.load %arg7[%c0_15, %c0_16] : memref<1x128xf32, #tpu.memory_space<vmem>>, vector<1x128xf32>
    %20 = vector.broadcast %19 : vector<1x128xf32> to vector<8x128xf32>
    %21 = arith.addf %18, %20 : vector<8x128xf32>
    %22 = vector.extract_strided_slice %21 {offsets = [0, 0], sizes = [8, 8], strides = [1, 1]} : vector<8x128xf32> to vector<8x8xf32>
    %c0_17 = arith.constant 0 : index
    %c0_18 = arith.constant 0 : index
    %23 = vector.load %arg8[%c0_17, %c0_18] : memref<8x8xf32, #tpu.memory_space<vmem>>, vector<8x8xf32>
    tpu.vector_store %arg8[%c0_17, %c0_18], %22 {strides = array<i32>} : memref<8x8xf32, #tpu.memory_space<vmem>>, vector<8x8xf32>,
    return
  }
  func.func @transform_0(%arg0: i32) -> (i32, i32) {
    %c0_i32 = arith.constant 0 : i32
    %c0_i32_0 = arith.constant 0 : i32
    return %arg0, %c0_i32 : i32, i32
  }
  func.func @transform_1(%arg0: i32) -> (i32, i32) {
    %c0_i32 = arith.constant 0 : i32
    %c0_i32_0 = arith.constant 0 : i32
    %c0_i32_1 = arith.constant 0 : i32
    return %c0_i32, %c0_i32_0 : i32, i32
  }
  func.func @transform_2(%arg0: i32) -> (i32, i32) {
    %c0_i32 = arith.constant 0 : i32
    %c0_i32_0 = arith.constant 0 : i32
    %c0_i32_1 = arith.constant 0 : i32
    return %c0_i32, %c0_i32_0 : i32, i32
  }
  func.func @transform_3(%arg0: i32) -> (i32, i32) {
    %c0_i32 = arith.constant 0 : i32
    %c0_i32_0 = arith.constant 0 : i32
    %c0_i32_1 = arith.constant 0 : i32
    return %c0_i32, %c0_i32_0 : i32, i32
  }
  func.func @transform_4(%arg0: i32) -> (i32, i32) {
    %c0_i32 = arith.constant 0 : i32
    %c0_i32_0 = arith.constant 0 : i32
    %c0_i32_1 = arith.constant 0 : i32
    return %c0_i32, %c0_i32_0 : i32, i32
  }
  func.func @transform_5(%arg0: i32) -> (i32, i32) {
    %c0_i32 = arith.constant 0 : i32
    %c0_i32_0 = arith.constant 0 : i32
    %c0_i32_1 = arith.constant 0 : i32
    return %c0_i32, %c0_i32_0 : i32, i32
  }
  func.func @transform_6(%arg0: i32) -> (i32, i32) {
    %c0_i32 = arith.constant 0 : i32
    %c0_i32_0 = arith.constant 0 : i32
    %c0_i32_1 = arith.constant 0 : i32
    return %c0_i32, %c0_i32_0 : i32, i32
  }
  func.func @transform_7(%arg0: i32) -> (i32, i32) {
    %c0_i32 = arith.constant 0 : i32
    %c0_i32_0 = arith.constant 0 : i32
    return %arg0, %c0_i32 : i32, i32
  }
}

</mosaic_0001>

<bundles_post_ra>
// kernel: tpu_custom_call.1
= control target key start
LH: loop header
LB: loop body
LE: loop exit
PB: predicated region body
PF: predicated region fallthrough
CT: control target
= control target key end

     0   :  { %12 = vsyncpa [#allocation3], 0  ;;  %s594_s0 = inlined_call_operand.hbm [shape: f32[8,8], index: 0, kind: input, shape index: {}]   ;;  %s595_s1 = inlined_call_operand.hbm [shape: f32[8,128], index: 1, kind: input, shape index: {}]   ;;  %s596_s2 = inlined_call_operand.vmem [shape: f32[1,128], index: 2, kind: input, shape index: {}]   ;;  %s597_s3 = inlined_call_operand.hbm [shape: bf16[128,128], index: 3, kind: input, shape index: {}]   ;;  %s598_s4 = inlined_call_operand.vmem [shape: f32[1,128], index: 4, kind: input, shape index: {}]   ;;  %s599_s5 = inlined_call_operand.hbm [shape: bf16[128,128], index: 5, kind: input, shape index: {}]   ;;  %s600_s6 = inlined_call_operand.vmem [shape: f32[1,128], index: 6, kind: input, shape index: {}]   ;;  %s601_s7 = inlined_call_operand.hbm [shape: f32[8,8], index: 7, kind: output, shape index: {}]  }
   0x1   :  { %13 = vsyncpa [#allocation6], 0 }
   0x2   :  { %14 = vsyncpa [#allocation9], 0  ;;  %s32_s26 = sshll.u32 %s595_s1, 4  ;;  %s33_s26 = int_to_ptr.hbm [resolvable:$true] %s32_s26 }
   0x3   :  { %15 = vsyncpa [#allocation4], 0  ;;  %s521_s27 = smov [#allocation5]   ;;  %s21_s8 = sshll.u32 %s594_s0, 4  ;;  %s22_s8 = int_to_ptr.hbm [resolvable:$true] %s21_s8 }
   0x4   :  { %s34_s28 = sshll.u32 %s521_s27, 4  ;;  %s522_s9 = smov [#allocation2]   ;;  %s35_s28 = int_to_ptr.vmem [resolvable:$true] %s34_s28 }
   0x5   :  { %37 = dma.hbm_to_vmem [thread:$0]  %s33_s26, 128, %s35_s28, [#allocation6]  }
   0x6   :  { %s23_s10 = sshll.u32 %s522_s9, 4  ;;  %s44_s13 = sshll.u32 %s597_s3, 4  ;;  %s24_s10 = int_to_ptr.vmem [resolvable:$true] %s23_s10  ;;  %s45_s13 = int_to_ptr.hbm [resolvable:$true] %s44_s13 }
   0x7   :  { %26 = dma.hbm_to_vmem [thread:$0]  %s22_s8, 128, %s24_s10, [#allocation3]  }
   0x8   :  { %s523_s1 = smov [#allocation7]   ;;  %s59_s17 = sshll.u32 %s599_s5, 4  ;;  %s60_s17 = int_to_ptr.hbm [resolvable:$true] %s59_s17 }
   0x9   :  { %s46_s14 = sshll.u32 %s523_s1, 4  ;;  %s524_s18 = smov 64   ;;  %s47_s14 = int_to_ptr.vmem [resolvable:$true] %s46_s14 }
   0xa   :  { %s525_s0 = smov 4   ;;  %s526_s19 = smov [#allocation8]  }
   0xb   :  { %52 = dma.hbm_to_vmem [thread:$0]  %s45_s13, 1024, %s47_s14, [#allocation6], %s524_s18, %s524_s18, %s525_s0  }
   0xc   :  { %s61_s20 = sshll.u32 %s526_s19, 4  ;;  %s62_s20 = int_to_ptr.vmem [resolvable:$true] %s61_s20 }
   0xd   :  { %67 = dma.hbm_to_vmem [thread:$0]  %s60_s17, 1024, %s62_s20, [#allocation9], %s524_s18, %s524_s18, %s525_s0  }
   0xe   :  { %513 = dma.done.wait [#allocation3], 128  }
   0xf   :  { %514 = vsyncadd [#allocation3], 4294967168 }
  0x10   :  { %515 = dma.done.wait [#allocation6], 1152  }
  0x11   :  { %516 = vsyncadd [#allocation6], 4294966144 }
  0x12   :  { %517 = dma.done.wait [#allocation9], 1024  }
  0x13   :  { %518 = vsyncadd [#allocation9], 4294966272  ;;  %vm92_vm0 = vcmask 64512   ;;  %v87_v0 = vld [vmem:[#allocation5] sm:$0xff]  ;;  %v86_v1 = vld [vmem:[#allocation2] sm:$0xff]  ;;  %s527_s24 = smov [#allocation10]  }
  0x14   :  { %v374_v2 = vld [vmem:[#allocation7 + $0x38] sm:$0xff]  ;;  %111 = vmatpush.msra.mxu0 %v87_v0  ;;  %v373_v3 = vld [vmem:[#allocation7 + $0x30] sm:$0xff]  ;;  %v372_v4 = vld [vmem:[#allocation7 + $0x28] sm:$0xff]  ;;  %s288_s25 = sshll.u32 %s527_s24, 4  ;;  %s290_s28 = sshll.u32 %s601_s7, 4  ;;  %s289_s25 = int_to_ptr.vmem [resolvable:$true] %s288_s25  ;;  %s291_s28 = int_to_ptr.hbm [resolvable:$true] %s290_s28 }
  0x15   :  { %302 = vmatmul.msk.f32.vlgmr.msra.gmra.mxu0 %vm92_vm0, %v86_v1  ;;  %186 = vmatpush.bf16.msra.mxu1 %v374_v2  ;;  %v371_v5 = vld [vmem:[#allocation7 + $0x20] sm:$0xff]  ;;  %v370_v6 = vld [vmem:[#allocation7 + $0x18] sm:$0xff]  ;;  %v369_v7 = vld [vmem:[#allocation7 + $0x10] sm:$0xff] }
  0x16   :  { %v368_v8 = vld [vmem:[#allocation7 + $0x8] sm:$0xff]  ;;  %v367_v9 = vld [vmem:[#allocation7] sm:$0xff]  ;;  %v382_v10 = vld [vmem:[#allocation8 + $0x38] sm:$0xff] }
  0x17   :  { %269 = vmatpush.bf16.msra.mxu2 %v382_v10  ;;  %v381_v11 = vld [vmem:[#allocation8 + $0x30] sm:$0xff]  ;;  %v380_v12 = vld [vmem:[#allocation8 + $0x28] sm:$0xff]  ;;  %v379_v13 = vld [vmem:[#allocation8 + $0x20] sm:$0xff] }
  0x18   :  { %v378_v14 = vld [vmem:[#allocation8 + $0x18] sm:$0xff]  ;;  %v377_v15 = vld [vmem:[#allocation8 + $0x10] sm:$0xff]  ;;  %v376_v21 = vld [vmem:[#allocation8 + $0x8] sm:$0xff] }
  0x19   :  { %187 = vmatpush.bf16.msra.mxu1 %v373_v3  ;;  %v390_v16 = vld [vmem:[%s596_s2] ss:$0 sm:$0xff]  ;;  %v375_v22 = vld [vmem:[#allocation8] sm:$0xff] }
  0x1a   :  { %v391_v23 = vld [vmem:[%s598_s4] ss:$0 sm:$0xff] }
  0x1b   :  { %270 = vmatpush.bf16.msra.mxu2 %v381_v11  ;;  %v392_v29 = vld [vmem:[%s600_s6] ss:$0 sm:$0xff] }
  0x1d   :  { %188 = vmatpush.bf16.msra.mxu1 %v372_v4 }
  0x1f   :  { %271 = vmatpush.bf16.msra.mxu2 %v380_v12 }
  0x21   :  { %189 = vmatpush.bf16.msra.mxu1 %v371_v5 }
  0x23   :  { %272 = vmatpush.bf16.msra.mxu2 %v379_v13 }
  0x25   :  { %190 = vmatpush.bf16.msra.mxu1 %v370_v6 }
  0x27   :  { %273 = vmatpush.bf16.msra.mxu2 %v378_v14 }
  0x29   :  { %191 = vmatpush.bf16.msra.mxu1 %v369_v7 }
  0x2b   :  { %274 = vmatpush.bf16.msra.mxu2 %v377_v15 }
  0x2d   :  { %192 = vmatpush.bf16.msra.mxu1 %v368_v8 }
  0x2f   :  { %275 = vmatpush.bf16.msra.mxu2 %v376_v21 }
  0x31   :  { %193 = vmatpush.bf16.msra.mxu1 %v367_v9 }
  0x33   :  { %276 = vmatpush.bf16.msra.mxu2 %v375_v22 }
  0x92   :  { %v113_v17 = vpop.f32.mrf.mxu0 }
  0x93   :  { %v114_v18 = vadd.f32 %v390_v16, %v113_v17 }
  0x95   :  { %v116_v19 = vmax.f32 %v114_v18, 0.0 }
  0x97   :  { %v117_v20 = vpack.c.bf16 %v116_v19, %v116_v19 }
  0x99   :  { %194 = vmatmul.bf16.vlgmr.msra.gmra.mxu1 %v117_v20 }
 0x116   :  { %v195_v24 = vpop.f32.mrf.mxu1 }
 0x117   :  { %v196_v25 = vadd.f32 %v391_v23, %v195_v24 }
 0x119   :  { %v199_v26 = vmax.f32 %v196_v25, 0.0 }
 0x11b   :  { %v200_v27 = vpack.c.bf16 %v199_v26, %v199_v26 }
 0x11d   :  { %277 = vmatmul.bf16.vlgmr.msra.gmra.mxu2 %v200_v27 }
 0x11e   :  { %v197_v28 = vpop.f32.mrf.mxu1 }
 0x1a0   :  { %v278_v30 = vpop.f32.mrf.mxu2 }
 0x1a1   :  { %v279_v31 = vadd.f32 %v392_v29, %v278_v30 }
 0x1a3   :  { %282 = vst.msk [vmem:[#allocation10] sm:$0xff] %vm92_vm0, %v279_v31 }
 0x1a4   :  { %293 = dma.vmem_to_hbm [thread:$0]  %s289_s25, 128, %s291_s28, [#allocation4]  }
 0x1a8   :  { %v280_v32 = vpop.f32.mrf.mxu2 }
 0x1a9   :  { %519 = dma.done.wait [#allocation4], 128  }
 0x1aa   :  { %520 = vsyncadd [#allocation4], 4294967168 }
 0x1ab   :  { %298 = vsyncpa [#allocation3], 1 }
 0x1ac   :  { %299 = vsyncpa [#allocation6], 1 }
 0x1ad   :  { %300 = vsyncpa [#allocation9], 1 }
 0x1ae   :  { %301 = vsyncpa [#allocation4], 1 }

</bundles_post_ra>
